<compile_context>
chip_gen: v6e
topology: v6e:2x2x1
jax: 0.10.0
libtpu: 0.0.40
codegen_flags: <defaults>
</compile_context>

<pallas_src>
import functools

import jax
import jax.numpy as jnp
from jax import lax
from jax.experimental import pallas as pl
from jax.experimental.pallas import tpu as pltpu

LANES = 128
SUBLANES = 8
MAX_TILE_ROWS = 2048       # 1 MiB / input block at f32
WIDE_ACC_ROWS = 32         # 4 independent vreg accumulation chains (ILP)
NUM_CORES = 2              # parallel grid axis; maps to 2 TCs on v7x


def _round_up(x, m):
    return ((x + m - 1) // m) * m


def _gauss_loss_kernel(pred_ref, gt_ref, out_ref, acc_ref, *,
                       alpha, beta, tile_rows, total_rows,
                       steps_per_core, acc_rows, exact):
    core = pl.program_id(0)
    step = pl.program_id(1)

    # Zero this core's partial accumulator at the start of its reduction loop.
    @pl.when(step == 0)
    def _():
        acc_ref[...] = jnp.zeros_like(acc_ref)

    pred = pred_ref[...].astype(jnp.float32)
    gt = gt_ref[...].astype(jnp.float32)

    one_m_pred = 1.0 - pred
    one_m_gt = 1.0 - gt
    pos = gt == 1.0
    neg = gt < 1.0

    # One log per element; pos/neg are disjoint and cover every valid element.
    # (NaN/Inf in the unselected branch cannot propagate through a select.)
    log_x = jnp.log(jnp.where(pos, pred, one_m_pred))

    # Integer powers -> plain VPU multiplies.
    pos_w = lax.integer_pow(one_m_pred, alpha)
    neg_w = lax.integer_pow(pred, alpha) * lax.integer_pow(one_m_gt, beta)
    weight = jnp.where(pos, pos_w, neg_w)
    # Keep exact PyTorch semantics: gt > 1 is neither pos nor neg -> contributes 0.
    contrib = jnp.where(pos | neg, log_x * weight, 0.0)

    def fold(c):
        # Fold the (tile_rows, 128) tile into acc_rows x 128 with pure VPU adds;
        # the cross-lane reduce happens once, outside the kernel.
        return c.reshape(-1, acc_rows, LANES).sum(axis=0)

    if exact:
        # Grid tiles the slab exactly: no masking anywhere.
        acc_ref[...] += fold(contrib)
    else:
        block_idx = core * steps_per_core + step        # logical (unclamped)
        start = block_idx * tile_rows
        full = (start + tile_rows) <= total_rows

        @pl.when(full)
        def _():
            acc_ref[...] += fold(contrib)

        @pl.when(jnp.logical_not(full))
        def _():
            # Ragged (or fully out-of-bounds) block: mask by global row index so
            # unspecified VMEM contents never reach the sum.
            row = lax.broadcasted_iota(jnp.int32, contrib.shape, 0)
            valid = (start + row) < total_rows
            acc_ref[...] += fold(jnp.where(valid, contrib, 0.0))

    # Each core emits its raw partial accumulator once, on its last step.
    @pl.when(step == pl.num_programs(1) - 1)
    def _():
        out_ref[...] = acc_ref[...]


def _partial_sum_jnp(pred, gt, alpha, beta):
    """Plain-jnp sum of log(x)*weight terms (used only for a tiny ragged tail)."""
    pred = pred.astype(jnp.float32)
    gt = gt.astype(jnp.float32)
    pos = gt == 1.0
    neg = gt < 1.0
    log_x = jnp.log(jnp.where(pos, pred, jnp.where(neg, 1.0 - pred, 1.0)))
    w = jnp.where(pos, (1.0 - pred) ** alpha, pred ** alpha * (1.0 - gt) ** beta)
    return jnp.sum(jnp.where(pos | neg, log_x * w, 0.0))


def gauss_weighted_loss(pred, gt, alpha=2, beta=4, reduction="sum"):
    """Pallas TPU implementation of GaussWeightedLoss.forward."""
    assert pred.shape == gt.shape
    n_elem = pred.size

    pred_f = jnp.ravel(pred)
    gt_f = jnp.ravel(gt)

    # Lane-aligned prefix goes to the kernel; any <128-element ragged tail is
    # summed with plain jnp (avoids a full-array pad/concatenate copy).
    n_aligned = (n_elem // LANES) * LANES
    tail_sum = jnp.float32(0.0)
    if n_aligned < n_elem:
        tail_sum = _partial_sum_jnp(pred_f[n_aligned:], gt_f[n_aligned:],
                                    int(alpha), int(beta))
        pred_f = pred_f[:n_aligned]
        gt_f = gt_f[:n_aligned]

    if n_aligned == 0:
        total = tail_sum
    else:
        rows = n_aligned // LANES
        tile_rows = min(MAX_TILE_ROWS, _round_up(rows, SUBLANES))
        total_blocks = pl.cdiv(rows, tile_rows)
        num_cores = NUM_CORES if total_blocks >= NUM_CORES else 1
        steps = pl.cdiv(total_blocks, num_cores)
        acc_rows = WIDE_ACC_ROWS if tile_rows % WIDE_ACC_ROWS == 0 else SUBLANES
        exact = (num_cores * steps * tile_rows == rows)
        last_block = total_blocks - 1

        pred_2d = pred_f.reshape(rows, LANES)   # zero-copy reshape
        gt_2d = gt_f.reshape(rows, LANES)

        def in_map(c, k):
            # Clamp so a fully-OOB grid iteration (uneven split across cores)
            # re-reads the last valid block; its contribution is masked to 0.
            return (jnp.minimum(c * steps + k, last_block), 0)

        kernel = functools.partial(
            _gauss_loss_kernel,
            alpha=int(alpha), beta=int(beta),
            tile_rows=tile_rows, total_rows=rows,
            steps_per_core=steps, acc_rows=acc_rows, exact=exact)

        partials = pl.pallas_call(
            kernel,
            out_shape=jax.ShapeDtypeStruct((num_cores * acc_rows, LANES),
                                           jnp.float32),
            grid_spec=pltpu.PrefetchScalarGridSpec(
                num_scalar_prefetch=0,
                grid=(num_cores, steps),
                in_specs=[
                    pl.BlockSpec((tile_rows, LANES), in_map),
                    pl.BlockSpec((tile_rows, LANES), in_map),
                ],
                out_specs=pl.BlockSpec((acc_rows, LANES), lambda c, k: (c, 0)),
                scratch_shapes=[pltpu.VMEM((acc_rows, LANES), jnp.float32)],
            ),
            compiler_params=pltpu.CompilerParams(
                dimension_semantics=("parallel", "arbitrary"),
                vmem_limit_bytes=32 * 1024 * 1024,
            ),
        )(pred_2d, gt_2d)

        total = jnp.sum(partials) + tail_sum

    loss = -total
    if reduction == "sum":
        return loss
    elif reduction == "mean":
        return loss / n_elem
    else:
        raise ValueError(f"unsupported reduction: {reduction}")


def _reference(pred, gt, alpha=2, beta=4, reduction="sum"):
    pred = pred.astype(jnp.float32)
    gt = gt.astype(jnp.float32)
    pos = gt == 1.0
    neg = gt < 1.0
    pos_loss = jnp.where(
        pos, jnp.log(jnp.where(pos, pred, 1.0)) * (1.0 - pred) ** alpha, 0.0
    ).sum()
    neg_loss = jnp.where(
        neg,
        jnp.log(jnp.where(neg, 1.0 - pred, 1.0))
        * pred ** alpha
        * (1.0 - gt) ** beta,
        0.0,
    ).sum()
    loss = -(pos_loss + neg_loss)
    if reduction == "mean":
        loss = loss / pred.size
    return loss


def _check(a, b, rtol=3e-4, atol=1e-2):
    assert jnp.allclose(a, b, rtol=rtol, atol=atol), (a, b)


if __name__ == "__main__":
    key = jax.random.PRNGKey(0)

    def make_inputs(k, shape):
        k1, k2, k3 = jax.random.split(k, 3)
        p = jax.nn.sigmoid(jax.random.normal(k1, shape, jnp.float32))
        p = jnp.clip(p, 1e-4, 1.0 - 1e-4)
        g = jax.random.uniform(k2, shape, jnp.float32, 0.0, 0.999)
        peaks = jax.random.uniform(k3, shape) > 0.97
        g = jnp.where(peaks, 1.0, g)
        return p, g

    k0, k1, k2 = jax.random.split(key, 3)

    # Primary small CornerNet-style heatmap (sum + mean reductions).
    pred, gt = make_inputs(k0, (2, 4, 16, 16))
    loss = jax.block_until_ready(gauss_weighted_loss(pred, gt))
    _check(loss, _reference(pred, gt), rtol=1e-5, atol=1e-5)
    loss_m = jax.block_until_ready(gauss_weighted_loss(pred, gt, reduction="mean"))
    _check(loss_m, _reference(pred, gt, reduction="mean"), rtol=1e-5, atol=1e-5)

    # numel not a multiple of 128: exercises the plain-jnp tail path.
    pred, gt = make_inputs(k1, (2, 3, 17, 11))
    loss = jax.block_until_ready(gauss_weighted_loss(pred, gt))
    _check(loss, _reference(pred, gt), rtol=1e-5, atol=1e-5)

    # Multi-block, dual-core grid with a ragged block and a clamped OOB block.
    pred, gt = make_inputs(k2, (10, 4, 128, 128))
    loss = jax.block_until_ready(gauss_weighted_loss(pred, gt))
    _check(loss, _reference(pred, gt))

    print("KERNEL_OK")
</pallas_src>

<mosaic_0001>
module attributes {stable_mosaic.version = 11 : i64} {
  func.func @_gauss_loss_kernel(%arg0: i32, %arg1: i32, %arg2: memref<16x128xf32, #tpu.memory_space<vmem>>, %arg3: memref<16x128xf32, #tpu.memory_space<vmem>>, %arg4: memref<8x128xf32, #tpu.memory_space<vmem>>, %arg5: memref<8x128xf32, #tpu.memory_space<vmem>>) attributes {dimension_semantics = [#tpu.dimension_semantics<parallel>, #tpu.dimension_semantics<arbitrary>], iteration_bounds = array<i64: 1, 1>, scalar_prefetch = 0 : i64, scratch_operands = 1 : i64, tpu.core_type = #tpu.core_type<tc>, window_params = [{transform_indices = @transform_0, window_bounds = array<i64: 16, 128>}, {transform_indices = @transform_1, window_bounds = array<i64: 16, 128>}, {transform_indices = @transform_2, window_bounds = array<i64: 8, 128>}]} {
    %c0_i32 = arith.constant 0 : i32
    %0 = arith.cmpi eq, %arg1, %c0_i32 : i32
    %1 = arith.extui %0 : i1 to i32
    %c0_i32_0 = arith.constant 0 : i32
    %2 = arith.cmpi ne, %1, %c0_i32_0 : i32
    scf.if %2 {
      %cst_15 = arith.constant 0.000000e+00 : f32
      %33 = vector.broadcast %cst_15 : f32 to vector<8x128xf32>
      %c0_16 = arith.constant 0 : index
      %c0_17 = arith.constant 0 : index
      %34 = vector.load %arg5[%c0_16, %c0_17] : memref<8x128xf32, #tpu.memory_space<vmem>>, vector<8x128xf32>
      tpu.vector_store %arg5[%c0_16, %c0_17], %33 {strides = array<i32>} : memref<8x128xf32, #tpu.memory_space<vmem>>, vector<8x128xf32>,
    } else {
    }
    %c0 = arith.constant 0 : index
    %c0_1 = arith.constant 0 : index
    %3 = vector.load %arg2[%c0, %c0_1] : memref<16x128xf32, #tpu.memory_space<vmem>>, vector<16x128xf32>
    %c0_2 = arith.constant 0 : index
    %c0_3 = arith.constant 0 : index
    %4 = vector.load %arg3[%c0_2, %c0_3] : memref<16x128xf32, #tpu.memory_space<vmem>>, vector<16x128xf32>
    %cst = arith.constant 1.000000e+00 : f32
    %5 = vector.broadcast %cst : f32 to vector<16x128xf32>
    %6 = arith.subf %5, %3 : vector<16x128xf32>
    %cst_4 = arith.constant 1.000000e+00 : f32
    %7 = vector.broadcast %cst_4 : f32 to vector<16x128xf32>
    %8 = arith.subf %7, %4 : vector<16x128xf32>
    %cst_5 = arith.constant 1.000000e+00 : f32
    %9 = vector.broadcast %cst_5 : f32 to vector<16x128xf32>
    %10 = arith.cmpf oeq, %4, %9 : vector<16x128xf32>
    %cst_6 = arith.constant 1.000000e+00 : f32
    %11 = vector.broadcast %cst_6 : f32 to vector<16x128xf32>
    %12 = arith.cmpf olt, %4, %11 : vector<16x128xf32>
    %13 = arith.select %10, %3, %6 : vector<16x128xi1>, vector<16x128xf32>
    %14 = math.log %13 : vector<16x128xf32>
    %15 = arith.mulf %6, %6 : vector<16x128xf32>
    %16 = arith.mulf %3, %3 : vector<16x128xf32>
    %17 = arith.mulf %8, %8 : vector<16x128xf32>
    %18 = arith.mulf %17, %17 : vector<16x128xf32>
    %19 = arith.mulf %16, %18 : vector<16x128xf32>
    %20 = arith.select %10, %15, %19 : vector<16x128xi1>, vector<16x128xf32>
    %21 = arith.ori %10, %12 : vector<16x128xi1>
    %22 = arith.mulf %14, %20 : vector<16x128xf32>
    %cst_7 = arith.constant 0.000000e+00 : f32
    %23 = vector.broadcast %cst_7 : f32 to vector<16x128xf32>
    %24 = arith.select %21, %22, %23 : vector<16x128xi1>, vector<16x128xf32>
    %c0_8 = arith.constant 0 : index
    %c0_9 = arith.constant 0 : index
    %25 = vector.load %arg5[%c0_8, %c0_9] : memref<8x128xf32, #tpu.memory_space<vmem>>, vector<8x128xf32>
    %26 = vector.shape_cast %24 : vector<16x128xf32> to vector<2x8x128xf32>
    %cst_10 = arith.constant dense<0.000000e+00> : vector<8x128xf32>
    %27 = vector.multi_reduction <add>, %26, %cst_10 [0] : vector<2x8x128xf32> to vector<8x128xf32>
    %28 = arith.addf %25, %27 : vector<8x128xf32>
    %c0_11 = arith.constant 0 : index
    %c0_12 = arith.constant 0 : index
    %29 = vector.load %arg5[%c0_11, %c0_12] : memref<8x128xf32, #tpu.memory_space<vmem>>, vector<8x128xf32>
    tpu.vector_store %arg5[%c0_11, %c0_12], %28 {strides = array<i32>} : memref<8x128xf32, #tpu.memory_space<vmem>>, vector<8x128xf32>,
    %c0_i32_13 = arith.constant 0 : i32
    %30 = arith.cmpi eq, %arg1, %c0_i32_13 : i32
    %31 = arith.extui %30 : i1 to i32
    %c0_i32_14 = arith.constant 0 : i32
    %32 = arith.cmpi ne, %31, %c0_i32_14 : i32
    scf.if %32 {
      %c0_15 = arith.constant 0 : index
      %c0_16 = arith.constant 0 : index
      %33 = vector.load %arg5[%c0_15, %c0_16] : memref<8x128xf32, #tpu.memory_space<vmem>>, vector<8x128xf32>
      %c0_17 = arith.constant 0 : index
      %c0_18 = arith.constant 0 : index
      %34 = vector.load %arg4[%c0_17, %c0_18] : memref<8x128xf32, #tpu.memory_space<vmem>>, vector<8x128xf32>
      tpu.vector_store %arg4[%c0_17, %c0_18], %33 {strides = array<i32>} : memref<8x128xf32, #tpu.memory_space<vmem>>, vector<8x128xf32>,
    } else {
    }
    return
  }
  func.func @transform_0(%arg0: i32, %arg1: i32) -> (i32, i32) {
    %c1_i32 = arith.constant 1 : i32
    %0 = arith.muli %arg0, %c1_i32 : i32
    %1 = arith.addi %0, %arg1 : i32
    %c0_i32 = arith.constant 0 : i32
    %2 = arith.minsi %1, %c0_i32 : i32
    %c0_i32_0 = arith.constant 0 : i32
    %c0_i32_1 = arith.constant 0 : i32
    return %2, %c0_i32_0 : i32, i32
  }
  func.func @transform_1(%arg0: i32, %arg1: i32) -> (i32, i32) {
    %c1_i32 = arith.constant 1 : i32
    %0 = arith.muli %arg0, %c1_i32 : i32
    %1 = arith.addi %0, %arg1 : i32
    %c0_i32 = arith.constant 0 : i32
    %2 = arith.minsi %1, %c0_i32 : i32
    %c0_i32_0 = arith.constant 0 : i32
    %c0_i32_1 = arith.constant 0 : i32
    return %2, %c0_i32_0 : i32, i32
  }
  func.func @transform_2(%arg0: i32, %arg1: i32) -> (i32, i32) {
    %c0_i32 = arith.constant 0 : i32
    %c0_i32_0 = arith.constant 0 : i32
    return %arg0, %c0_i32 : i32, i32
  }
}

</mosaic_0001>

<bundles_post_ra>
// kernel: tpu_custom_call.1
= control target key start
LH: loop header
LB: loop body
LE: loop exit
PB: predicated region body
PF: predicated region fallthrough
CT: control target
= control target key end

     0   :  { %7 = vsyncpa [#allocation4], 0  ;;  %s240_s0 = inlined_call_operand.hbm [shape: f32[16,128], index: 0, kind: input, shape index: {}]   ;;  %s241_s1 = inlined_call_operand.hbm [shape: f32[16,128], index: 1, kind: input, shape index: {}]   ;;  %s242_s2 = inlined_call_operand.hbm [shape: f32[8,128], index: 2, kind: output, shape index: {}]  }
   0x1   :  { %8 = vsyncpa [#allocation7], 0 }
   0x2   :  { %9 = vsyncpa [#allocation5], 0  ;;  %s205_s9 = smov [#allocation3]  }
   0x3   :  { %s21_s10 = sshll.u32 %s205_s9, 4  ;;  %s22_s10 = int_to_ptr.vmem [resolvable:$true] %s21_s10 }
   0x4   :  { %s147_s11 = scalar_lea.vmem %s22_s10, 256  ;;  %p152_p1 = scmp.lt.s32.totalorder %s22_s10, %s22_s10 }
   0x5   :  { %p148_p0 = scmp.ne.s32.totalorder %s22_s10, %s147_s11  ;;  %p153_p2 = scmp.lt.s32.totalorder %s147_s11, %s147_s11 }
   0x7   :  { %p154_p3 = por %p153_p2, %p152_p1 }
   0x9   :  { %p155_p4 = pnand %p154_p3, %p148_p0 }
   0xb   :  { %158 = shalt.err (!%p155_p4)
}
   0xc   :  { %s206_s12 = smov 128   ;;  %s207_s13 = smov 8  }
   0xd   :  { %27 = dma.hbm_to_vmem [thread:$0]  %s240_s0, 256, %s22_s10, [#allocation4], %s206_s12, %s206_s12, %s207_s13  }
   0xe   :  { %s208_s16 = smov [#allocation6]  }
   0xf   :  { %s39_s17 = sshll.u32 %s208_s16, 4  ;;  %s40_s17 = int_to_ptr.vmem [resolvable:$true] %s39_s17 }
  0x10   :  { %s167_s18 = scalar_lea.vmem %s40_s17, 256  ;;  %p172_p6 = scmp.lt.s32.totalorder %s40_s17, %s40_s17 }
  0x11   :  { %p168_p5 = scmp.ne.s32.totalorder %s40_s17, %s167_s18  ;;  %p173_p7 = scmp.lt.s32.totalorder %s167_s18, %s167_s18 }
  0x13   :  { %p174_p8 = por %p173_p7, %p172_p6 }
  0x15   :  { %p175_p9 = pnand %p174_p8, %p168_p5 }
  0x17   :  { %178 = shalt.err (!%p175_p9)
}
  0x18   :  { %45 = dma.hbm_to_vmem [thread:$0]  %s241_s1, 256, %s40_s17, [#allocation7], %s206_s12, %s206_s12, %s207_s13  }
  0x19   :  { %199 = dma.done.wait [#allocation4], 256  }
  0x1a   :  { %200 = vsyncadd [#allocation4], 4294967040 }
  0x1b   :  { %201 = dma.done.wait [#allocation7], 256  }
  0x1c   :  { %202 = vsyncadd [#allocation7], 4294967040  ;;  %v65_v0 = vld [vmem:[#allocation3] sm:$0xff]  ;;  %v66_v1 = vld [vmem:[#allocation3 + $0x8] sm:$0xff]  ;;  %s209_s0 = smov [#allocation8]  }
  0x1d   :  { %v67_v2 = vld [vmem:[#allocation6] sm:$0xff]  ;;  %v68_v3 = vld [vmem:[#allocation6 + $0x8] sm:$0xff]  ;;  %v69_v4 = vsub.f32 1.0, %v65_v0  ;;  %v70_v5 = vsub.f32 1.0, %v66_v1  ;;  %v85_v12 = vmul.f32 %v65_v0, %v65_v0  ;;  %v86_v14 = vmul.f32 %v66_v1, %v66_v1  ;;  %s116_s1 = sshll.u32 %s209_s0, 4  ;;  %s117_s1 = int_to_ptr.vmem [resolvable:$true] %s116_s1 }
  0x1e   :  { %v71_v6 = vsub.f32 1.0, %v67_v2  ;;  %vm73_vm0 = vcmp.eq.f32.partialorder %v67_v2, 1.0  ;;  %v72_v7 = vsub.f32 1.0, %v68_v3  ;;  %vm74_vm1 = vcmp.eq.f32.partialorder %v68_v3, 1.0  ;;  %s179_s21 = scalar_lea.vmem %s117_s1, 128  ;;  %p184_p11 = scmp.lt.s32.totalorder %s117_s1, %s117_s1 }
  0x1f   :  { %v77_v8 = vsel %vm73_vm0, %v65_v0, %v69_v4  ;;  %v78_v9 = vsel %vm74_vm1, %v66_v1, %v70_v5  ;;  %v83_v16 = vmul.f32 %v69_v4, %v69_v4  ;;  %v84_v18 = vmul.f32 %v70_v5, %v70_v5  ;;  %p180_p10 = scmp.ne.s32.totalorder %s117_s1, %s179_s21  ;;  %p185_p12 = scmp.lt.s32.totalorder %s179_s21, %s179_s21 }
  0x20   :  { %135 = vlog2.f32 %v77_v8  ;;  %v87_v10 = vmul.f32 %v71_v6, %v71_v6  ;;  %v88_v11 = vmul.f32 %v72_v7, %v72_v7  ;;  %vm75_vm2 = vcmp.lt.f32.partialorder %v67_v2, 1.0 }
  0x21   :  { %137 = vlog2.f32 %v78_v9  ;;  %vm76_vm3 = vcmp.lt.f32.partialorder %v68_v3, 1.0  ;;  %vm95_vm4 = vmor %vm73_vm0, %vm75_vm2  ;;  %p186_p13 = por %p185_p12, %p184_p11 }
  0x22   :  { %v89_v13 = vmul.f32 %v87_v10, %v87_v10  ;;  %v90_v15 = vmul.f32 %v88_v11, %v88_v11  ;;  %vm96_vm5 = vmor %vm74_vm1, %vm76_vm3 }
  0x23   :  { %p187_p0 = pnand %p186_p13, %p180_p10 }
  0x24   :  { %v91_v17 = vmul.f32 %v89_v13, %v85_v12  ;;  %v92_v19 = vmul.f32 %v90_v15, %v86_v14 }
  0x26   :  { %v93_v21 = vsel %vm73_vm0, %v83_v16, %v91_v17  ;;  %v94_v24 = vsel %vm74_vm1, %v84_v18, %v92_v19 }
  0x2d   :  { %v136_v20 = vpop.eup %135 }
  0x2e   :  { %v138_v22 = vpop.eup %137  ;;  %v80_v23 = vmul.f32 0.6931472, %v136_v20 }
  0x2f   :  { %v82_v25 = vmul.f32 0.6931472, %v138_v22 }
  0x30   :  { %v97_v26 = vmul.f32 %v93_v21, %v80_v23 }
  0x31   :  { %v98_v27 = vmul.f32 %v94_v24, %v82_v25 }
  0x32   :  { %v99_v28 = vsel %vm95_vm4, %v97_v26, 0.0 }
  0x33   :  { %v100_v29 = vsel %vm96_vm5, %v98_v27, 0.0 }
  0x34   :  { %v102_v30 = vadd.f32 %v100_v29, %v99_v28 }
  0x36   :  { %109 = vst [vmem:[#allocation8] sm:$0xff] %v102_v30 }
  0x37   :  { %190 = shalt.err (!%p187_p0)
}
  0x38   :  { %119 = dma.vmem_to_hbm [thread:$0]  %s117_s1, 128, %s242_s2, [#allocation5]  }
  0x39   :  { %203 = dma.done.wait [#allocation5], 128  }
  0x3a   :  { %204 = vsyncadd [#allocation5], 4294967168 }
  0x3b   :  { %123 = vsyncpa [#allocation4], 1 }
  0x3c   :  { %124 = vsyncpa [#allocation7], 1 }
  0x3d   :  { %125 = vsyncpa [#allocation5], 1 }

</bundles_post_ra>
